<compile_context>
chip_gen: v6e
topology: v6e:2x2x1
jax: 0.10.0
libtpu: 0.0.40
codegen_flags: <defaults>
</compile_context>

<pallas_src>
import jax
import jax.numpy as jnp
from jax.experimental import pallas as pl
from jax.experimental.pallas import tpu as pltpu


def mlp_kernel(x_ref, w1_ref, b1_ref, w2_ref, b2_ref, w3_ref, b3_ref, o_ref):
    # MXU path in bf16 with f32 accumulation; elementwise math stays f32
    # (v5e VPU has no bf16 arithmetic).
    x = x_ref[...]
    if x.dtype != jnp.bfloat16:          # trace-time branch; no cast if x is bf16
        x = x.astype(jnp.bfloat16)

    # layer1 + ReLU  (w1 arrives pre-cast to bf16 -> no per-step VPU cast)
    h1 = jnp.dot(x, w1_ref[...], preferred_element_type=jnp.float32)
    h1 = jnp.maximum(h1 + b1_ref[...], 0.0)                              # (TB, 64) f32

    # layer2 + ReLU
    h2 = jnp.dot(h1.astype(jnp.bfloat16), w2_ref[...],
                 preferred_element_type=jnp.float32)
    h2 = jnp.maximum(h2 + b2_ref[...], 0.0)                              # (TB, 32) f32

    # output_layer (32 -> 1) on the VPU/XLU: multiply by the (1, 32) f32 weight row
    # and lane-reduce instead of an N=1 MXU matmul.  b3 is an SMEM scalar.
    z = jnp.sum(h2 * w3_ref[...], axis=-1, keepdims=True) + b3_ref[0, 0]  # (TB, 1)
    s = pl.reciprocal(1.0 + jnp.exp(-z), approx=True)                     # sigmoid

    # Lane-dense store: (TB, 1) -> (1, TB) row of the (1, B) output.
    o_ref[...] = jnp.transpose(s)


def _round_up(n, m):
    return ((n + m - 1) // m) * m


def _vmem_footprint_bytes(tile_b, d_in):
    """Pessimistic (flat-sum) in-kernel VMEM estimate: includes 128-lane / 8-sublane
    padding, double-buffered pipeline I/O and the f32/bf16 temporaries."""
    LANE, SUB = 128, 8
    F32, BF16 = 4, 2
    dpad = _round_up(d_in, LANE)
    tb = _round_up(tile_b, SUB)
    x_io = 2 * tb * dpad * F32                        # x tile (f32), double-buffered
    o_io = 2 * SUB * _round_up(tile_b, LANE) * F32    # (1, tile_b) out tile, x2
    w_io = 2 * (_round_up(d_in, SUB) * LANE * BF16    # w1 bf16, 64 lanes padded->128
                + 64 * LANE * BF16                    # w2 bf16
                + 3 * SUB * LANE * F32)               # b1, b2, w3_row (f32)
    tmp = (tb * dpad * BF16                           # x bf16 copy for the MXU
           + tb * LANE * (F32 + BF16)                 # h1 f32 + bf16 (lane-padded)
           + 2 * tb * LANE * F32)                     # h2 f32 + elementwise slack
    return x_io + o_io + w_io + tmp


_VMEM_SIZING_BUDGET = 26 << 20   # tile-sizing budget (slack under the scoped limit)
_VMEM_LIMIT_BYTES = 40 << 20     # > sizing budget, < v7x's 64 MiB physical VMEM


def _choose_tile_b(batch, d_in, *, max_tile=8192):
    """Pick a batch tile that carries >= ~1 MiB of x per tile (amortizes the
    ~0.35 us/step pipeline overhead) while the honest VMEM footprint fits the
    sizing budget.  (On v7x one could roughly double max_tile; kept portable.)"""
    if batch <= max_tile and _vmem_footprint_bytes(batch, d_in) <= _VMEM_SIZING_BUDGET:
        return batch                       # single block == full array: no (8,128) rule
    tile = max_tile
    while tile > 128 and _vmem_footprint_bytes(tile, d_in) > _VMEM_SIZING_BUDGET:
        tile -= 128
    return tile


def mlp_forward(x, params, tile_b=None):
    """x: (B, D_in) float32 (or bfloat16); params: dict w1,b1,w2,b2,w3,b3."""
    B, d_in = x.shape
    w1, b1, w2, b2, w3, b3 = (params[k] for k in ("w1", "b1", "w2", "b2", "w3", "b3"))

    # Pre-cast the MXU weights to bf16 once; biases + output row stay f32 (VPU path).
    w1_bf = w1.astype(jnp.bfloat16)
    w2_bf = w2.astype(jnp.bfloat16)
    w3_row = w3.reshape(1, -1).astype(jnp.float32)   # (32, 1) -> (1, 32)

    if tile_b is None:
        tile_b = _choose_tile_b(B, d_in)
    if tile_b >= B:
        tile_b = B                         # single block covering the whole batch
    else:
        tile_b = _round_up(tile_b, 128)    # multi-tile blocks must be (8,128)-aligned
        if tile_b >= B:
            tile_b = B
    num_tiles = pl.cdiv(B, tile_b)         # last block may be partial (edge-masked)

    out = pl.pallas_call(
        mlp_kernel,
        out_shape=jax.ShapeDtypeStruct((1, B), jnp.float32),
        grid=(num_tiles,),
        in_specs=[
            # x: streamed per batch tile (double-buffered); no wrapper-side pad copy.
            pl.BlockSpec((tile_b, d_in), lambda i: (i, 0)),
            # Weights/biases: constant index_map -> fetched once, VMEM-resident.
            pl.BlockSpec((d_in, 64), lambda i: (0, 0)),
            pl.BlockSpec((1, 64), lambda i: (0, 0)),
            pl.BlockSpec((64, 32), lambda i: (0, 0)),
            pl.BlockSpec((1, 32), lambda i: (0, 0)),
            pl.BlockSpec((1, 32), lambda i: (0, 0)),
            # b3: single scalar in SMEM.
            pl.BlockSpec(memory_space=pltpu.MemorySpace.SMEM),
        ],
        # Lane-dense output: each grid step writes a (1, tile_b) row segment; the
        # partial last segment (B % tile_b) is masked on store by Pallas.
        out_specs=pl.BlockSpec((1, tile_b), lambda i: (0, i)),
        compiler_params=pltpu.CompilerParams(
            dimension_semantics=("parallel",),      # v7x: try pltpu.CORE_PARALLEL
            vmem_limit_bytes=_VMEM_LIMIT_BYTES,
        ),
    )(x, w1_bf, b1, w2_bf, b2, w3_row, b3)

    return out.reshape(B, 1)


def init_params(key, input_size):
    """Deterministic init mimicking nn.Linear's U(-1/sqrt(fan_in), 1/sqrt(fan_in))."""
    def linear(k, fan_in, fan_out):
        kw, kb = jax.random.split(k)
        bound = 1.0 / jnp.sqrt(float(fan_in))
        w = jax.random.uniform(kw, (fan_in, fan_out), jnp.float32, -bound, bound)
        b = jax.random.uniform(kb, (1, fan_out), jnp.float32, -bound, bound)
        return w, b

    k1, k2, k3 = jax.random.split(key, 3)
    w1, b1 = linear(k1, input_size, 64)
    w2, b2 = linear(k2, 64, 32)
    w3, b3 = linear(k3, 32, 1)
    return {"w1": w1, "b1": b1, "w2": w2, "b2": b2, "w3": w3, "b3": b3}


def mlp_reference(x, params):
    h1 = jnp.maximum(x @ params["w1"] + params["b1"], 0.0)
    h2 = jnp.maximum(h1 @ params["w2"] + params["b2"], 0.0)
    return jax.nn.sigmoid(h2 @ params["w3"] + params["b3"])


if __name__ == "__main__":
    key = jax.random.PRNGKey(0)
    kx, kp = jax.random.split(key)

    batch, input_size = 8, 32
    x = jax.random.normal(kx, (batch, input_size), jnp.float32)
    params = init_params(kp, input_size)

    out = jax.block_until_ready(mlp_forward(x, params))
    ref = mlp_reference(x, params)
    assert out.shape == (batch, 1)
    # bf16 MXU path vs f32 reference -> loosened tolerance.
    assert jnp.allclose(out, ref, atol=2e-2, rtol=2e-2), float(jnp.max(jnp.abs(out - ref)))

    # Second case: multi-tile grid with a partial edge block (1500 % 512 != 0) ->
    # exercises the no-pad edge-block path and the lane-dense multi-block output.
    x2 = jax.random.normal(kx, (1500, input_size), jnp.float32)
    out2 = jax.block_until_ready(mlp_forward(x2, params, tile_b=512))
    ref2 = mlp_reference(x2, params)
    assert out2.shape == (1500, 1)
    assert jnp.allclose(out2, ref2, atol=2e-2, rtol=2e-2), float(jnp.max(jnp.abs(out2 - ref2)))

    print("KERNEL_OK")
</pallas_src>

<mosaic_0001>
module attributes {stable_mosaic.version = 11 : i64} {
  func.func @mlp_kernel(%arg0: i32, %arg1: memref<8x32xf32, #tpu.memory_space<vmem>>, %arg2: memref<32x64xbf16, #tpu.memory_space<vmem>>, %arg3: memref<1x64xf32, #tpu.memory_space<vmem>>, %arg4: memref<64x32xbf16, #tpu.memory_space<vmem>>, %arg5: memref<1x32xf32, #tpu.memory_space<vmem>>, %arg6: memref<1x32xf32, #tpu.memory_space<vmem>>, %arg7: memref<1x1xf32, #tpu.memory_space<smem>>, %arg8: memref<1x8xf32, #tpu.memory_space<vmem>>) attributes {dimension_semantics = [#tpu.dimension_semantics<parallel>], iteration_bounds = array<i64: 1>, scalar_prefetch = 0 : i64, scratch_operands = 0 : i64, tpu.core_type = #tpu.core_type<tc>, window_params = [{transform_indices = @transform_0, window_bounds = array<i64: 8, 32>}, {pipeline_mode = #tpu.pipeline_mode<synchronous>, transform_indices = @transform_1, window_bounds = array<i64: 32, 64>}, {pipeline_mode = #tpu.pipeline_mode<synchronous>, transform_indices = @transform_2, window_bounds = array<i64: 1, 64>}, {pipeline_mode = #tpu.pipeline_mode<synchronous>, transform_indices = @transform_3, window_bounds = array<i64: 64, 32>}, {pipeline_mode = #tpu.pipeline_mode<synchronous>, transform_indices = @transform_4, window_bounds = array<i64: 1, 32>}, {pipeline_mode = #tpu.pipeline_mode<synchronous>, transform_indices = @transform_5, window_bounds = array<i64: 1, 32>}, {transform_indices = @transform_6, window_bounds = array<i64: 1, 1>}, {transform_indices = @transform_7, window_bounds = array<i64: 1, 8>}]} {
    %c0 = arith.constant 0 : index
    %c0_0 = arith.constant 0 : index
    %0 = vector.load %arg1[%c0, %c0_0] : memref<8x32xf32, #tpu.memory_space<vmem>>, vector<8x32xf32>
    %1 = arith.truncf %0 : vector<8x32xf32> to vector<8x32xbf16>
    %c0_1 = arith.constant 0 : index
    %c0_2 = arith.constant 0 : index
    %2 = vector.load %arg2[%c0_1, %c0_2] : memref<32x64xbf16, #tpu.memory_space<vmem>>, vector<32x64xbf16>
    %cst = arith.constant dense<0.000000e+00> : vector<8x64xf32>
    %3 = tpu.matmul %1, %2, %cst {dimension_numbers = #tpu.dot_dimension_numbers<[1], [0], [0], [1], [0, 0, 1, 1], [], []>} : vector<8x32xbf16>, vector<32x64xbf16>, vector<8x64xf32> -> vector<8x64xf32>
    %c0_3 = arith.constant 0 : index
    %c0_4 = arith.constant 0 : index
    %4 = vector.load %arg3[%c0_3, %c0_4] : memref<1x64xf32, #tpu.memory_space<vmem>>, vector<1x64xf32>
    %5 = vector.broadcast %4 : vector<1x64xf32> to vector<8x64xf32>
    %6 = arith.addf %3, %5 : vector<8x64xf32>
    %cst_5 = arith.constant 0.000000e+00 : f32
    %7 = vector.broadcast %cst_5 : f32 to vector<8x64xf32>
    %8 = arith.maximumf %6, %7 : vector<8x64xf32>
    %9 = arith.truncf %8 : vector<8x64xf32> to vector<8x64xbf16>
    %c0_6 = arith.constant 0 : index
    %c0_7 = arith.constant 0 : index
    %10 = vector.load %arg4[%c0_6, %c0_7] : memref<64x32xbf16, #tpu.memory_space<vmem>>, vector<64x32xbf16>
    %cst_8 = arith.constant dense<0.000000e+00> : vector<8x32xf32>
    %11 = tpu.matmul %9, %10, %cst_8 {dimension_numbers = #tpu.dot_dimension_numbers<[1], [0], [0], [1], [0, 0, 1, 1], [], []>} : vector<8x64xbf16>, vector<64x32xbf16>, vector<8x32xf32> -> vector<8x32xf32>
    %c0_9 = arith.constant 0 : index
    %c0_10 = arith.constant 0 : index
    %12 = vector.load %arg5[%c0_9, %c0_10] : memref<1x32xf32, #tpu.memory_space<vmem>>, vector<1x32xf32>
    %13 = vector.broadcast %12 : vector<1x32xf32> to vector<8x32xf32>
    %14 = arith.addf %11, %13 : vector<8x32xf32>
    %cst_11 = arith.constant 0.000000e+00 : f32
    %15 = vector.broadcast %cst_11 : f32 to vector<8x32xf32>
    %16 = arith.maximumf %14, %15 : vector<8x32xf32>
    %c0_12 = arith.constant 0 : index
    %c0_13 = arith.constant 0 : index
    %17 = vector.load %arg6[%c0_12, %c0_13] : memref<1x32xf32, #tpu.memory_space<vmem>>, vector<1x32xf32>
    %18 = vector.broadcast %17 : vector<1x32xf32> to vector<8x32xf32>
    %19 = arith.mulf %16, %18 : vector<8x32xf32>
    %cst_14 = arith.constant dense<0.000000e+00> : vector<8xf32>
    %20 = vector.multi_reduction <add>, %19, %cst_14 [1] : vector<8x32xf32> to vector<8xf32>
    %21 = vector.shape_cast %20 : vector<8xf32> to vector<8x1xf32>
    %c0_15 = arith.constant 0 : index
    %c0_16 = arith.constant 0 : index
    %22 = memref.load %arg7[%c0_15, %c0_16] : memref<1x1xf32, #tpu.memory_space<smem>>
    %23 = vector.broadcast %22 : f32 to vector<8x1xf32>
    %24 = arith.addf %21, %23 : vector<8x1xf32>
    %cst_17 = arith.constant 0.000000e+00 : f32
    %25 = vector.broadcast %cst_17 : f32 to vector<8x1xf32>
    %26 = arith.subf %25, %24 : vector<8x1xf32>
    %27 = math.exp %26 : vector<8x1xf32>
    %cst_18 = arith.constant 1.000000e+00 : f32
    %28 = vector.broadcast %cst_18 : f32 to vector<8x1xf32>
    %29 = arith.addf %28, %27 : vector<8x1xf32>
    %30 = tpu.reciprocal %29 {approx = true} : vector<8x1xf32> -> vector<8x1xf32>
    %31 = tpu.transpose %30, [1, 0] : vector<8x1xf32> -> vector<1x8xf32>
    %c0_19 = arith.constant 0 : index
    %c0_20 = arith.constant 0 : index
    %32 = vector.load %arg8[%c0_19, %c0_20] : memref<1x8xf32, #tpu.memory_space<vmem>>, vector<1x8xf32>
    tpu.vector_store %arg8[%c0_19, %c0_20], %31 {strides = array<i32>} : memref<1x8xf32, #tpu.memory_space<vmem>>, vector<1x8xf32>,
    return
  }
  func.func @transform_0(%arg0: i32) -> (i32, i32) {
    %c0_i32 = arith.constant 0 : i32
    %c0_i32_0 = arith.constant 0 : i32
    return %arg0, %c0_i32 : i32, i32
  }
  func.func @transform_1(%arg0: i32) -> (i32, i32) {
    %c0_i32 = arith.constant 0 : i32
    %c0_i32_0 = arith.constant 0 : i32
    %c0_i32_1 = arith.constant 0 : i32
    return %c0_i32, %c0_i32_0 : i32, i32
  }
  func.func @transform_2(%arg0: i32) -> (i32, i32) {
    %c0_i32 = arith.constant 0 : i32
    %c0_i32_0 = arith.constant 0 : i32
    %c0_i32_1 = arith.constant 0 : i32
    return %c0_i32, %c0_i32_0 : i32, i32
  }
  func.func @transform_3(%arg0: i32) -> (i32, i32) {
    %c0_i32 = arith.constant 0 : i32
    %c0_i32_0 = arith.constant 0 : i32
    %c0_i32_1 = arith.constant 0 : i32
    return %c0_i32, %c0_i32_0 : i32, i32
  }
  func.func @transform_4(%arg0: i32) -> (i32, i32) {
    %c0_i32 = arith.constant 0 : i32
    %c0_i32_0 = arith.constant 0 : i32
    %c0_i32_1 = arith.constant 0 : i32
    return %c0_i32, %c0_i32_0 : i32, i32
  }
  func.func @transform_5(%arg0: i32) -> (i32, i32) {
    %c0_i32 = arith.constant 0 : i32
    %c0_i32_0 = arith.constant 0 : i32
    %c0_i32_1 = arith.constant 0 : i32
    return %c0_i32, %c0_i32_0 : i32, i32
  }
  func.func @transform_6(%arg0: i32) -> (i32, i32) {
    %c0_i32 = arith.constant 0 : i32
    %c0_i32_0 = arith.constant 0 : i32
    %c0_i32_1 = arith.constant 0 : i32
    return %c0_i32, %c0_i32_0 : i32, i32
  }
  func.func @transform_7(%arg0: i32) -> (i32, i32) {
    %c0_i32 = arith.constant 0 : i32
    %c0_i32_0 = arith.constant 0 : i32
    return %c0_i32, %arg0 : i32, i32
  }
}

</mosaic_0001>

<bundles_post_ra>
// kernel: tpu_custom_call.1
= control target key start
LH: loop header
LB: loop body
LE: loop exit
PB: predicated region body
PF: predicated region fallthrough
CT: control target
= control target key end

     0   :  { %v325_v1 = vmov 0.0   ;;  %vm326_vm0 = vmmov 0   ;;  %vm54_vm1 = vcmask 261120   ;;  %s406_s0 = inlined_call_operand.vmem [shape: f32[8,32], index: 0, kind: input, shape index: {}]   ;;  %s407_s1 = inlined_call_operand.vmem [shape: bf16[32,64], index: 1, kind: input, shape index: {}]   ;;  %s408_s2 = inlined_call_operand.vmem [shape: f32[1,64], index: 2, kind: input, shape index: {}]   ;;  %s409_s3 = inlined_call_operand.vmem [shape: bf16[64,32], index: 3, kind: input, shape index: {}]   ;;  %s410_s4 = inlined_call_operand.vmem [shape: f32[1,32], index: 4, kind: input, shape index: {}]   ;;  %s411_s5 = inlined_call_operand.vmem [shape: f32[1,32], index: 5, kind: input, shape index: {}]   ;;  %s412_s6 = inlined_call_operand.<no memory space> [shape: f32[1,1], index: 6, kind: input, shape index: {}]   ;;  %s413_s7 = inlined_call_operand.hbm [shape: f32[1,8], index: 7, kind: output, shape index: {}]  }
   0x1   :  { %v293_v0 = vld [vmem:[%s407_s1 + $0x8] sm:$0xff]   ;;  %270 = vmatprep.subr.bf16.mxu0 %v325_v1  ;;  %v294_v2 = vld [vmem:[%s407_s1] sm:$0xff]   ;;  %278 = vmatprep.subr.bf16.mxu1 %v325_v1  ;;  %v295_v4 = vld [vmem:[%s409_s3 + $0x18] sm:$0xff]  }
   0x2   :  { %271 = vmatpush3.bf16.msra.mxu0 %v293_v0  ;;  %274 = vmatprep.mubr.msk.bf16.mxu0 %vm326_vm0, %v325_v1  ;;  %v29_v3 = vld [vmem:[%s406_s0] sm:$0xff]  ;;  %v296_v5 = vld [vmem:[%s409_s3 + $0x10] sm:$0xff]  }
   0x3   :  { %272 = vmatprep.subr.bf16.mxu0 %v325_v1  ;;  %286 = vmatprep.mubr.msk.bf16.mxu1 %vm326_vm0, %v325_v1  ;;  %v30_v6 = vpack.c.bf16 %v29_v3, %v29_v3 }
   0x4   :  { %279 = vmatpush3.bf16.msra.mxu1 %v295_v4 }
   0x5   :  { %280 = vmatprep.subr.bf16.mxu1 %v325_v1 }
   0x6   :  { %273 = vmatpush3.bf16.msra.mxu0 %v294_v2 }
   0x7   :  { %13 = vsyncpa [#allocation4], 0  ;;  %v297_v7 = vld [vmem:[%s409_s3 + $0x8] sm:$0xff]   ;;  %v298_v8 = vld [vmem:[%s409_s3] sm:$0xff]   ;;  %vm139_vm2 = vcmask 523264   ;;  %v196_v27 = vstv %s412_s6  ;;  %vm235_vm3 = vcmask 57344  }
   0x8   :  { %281 = vmatpush3.bf16.msra.mxu1 %v296_v5  ;;  %v251_v9 = vld [vmem:[%s408_s2] ss:$0 sm:$0xff] }
   0x9   :  { %275 = vmatmul.mubr.msk.bf16.vlgmr.msra.gmra.mxu0 %vm54_vm1, %v30_v6  ;;  %282 = vmatprep.subr.bf16.mxu1 %v325_v1  ;;  %v255_v17 = vld [vmem:[%s410_s4] ss:$0 sm:$0xff]  ;;  %s327_s4 = smov [#allocation3]  }
   0xa   :  { %v261_v21 = vld [vmem:[%s411_s5] ss:$0 sm:$0xff]  ;;  %s243_s5 = sshll.u32 %s327_s4, 4  ;;  %s244_s5 = int_to_ptr.vmem [resolvable:$true] %s243_s5 }
   0xb   :  { %s303_s19 = scalar_lea.vmem %s244_s5, 16  ;;  %s307_s20 = scalar_lea.vmem %s244_s5, 32 }
   0xc   :  { %283 = vmatpush3.bf16.msra.mxu1 %v297_v7  ;;  %p304_p0 = scmp.ne.s32.totalorder %s244_s5, %s303_s19  ;;  %p308_p1 = scmp.lt.s32.totalorder %s244_s5, %s244_s5 }
   0xd   :  { %284 = vmatprep.subr.bf16.mxu1 %v325_v1  ;;  %p309_p2 = scmp.lt.s32.totalorder %s307_s20, %s303_s19 }
   0xf   :  { %p310_p3 = por %p309_p2, %p308_p1 }
  0x10   :  { %285 = vmatpush3.bf16.msra.mxu1 %v298_v8 }
  0x11   :  { %p311_p4 = pnand %p310_p3, %p304_p0 }
  0xc9   :  { %v92_v10 = vpop.f32.mrf.mxu0 }
  0xca   :  { %v93_v11 = vadd.f32 %v251_v9, %v92_v10 }
  0xcb   :  { %v276_v12 = vpop.f32.mrf.mxu0 }
  0xcc   :  { %v98_v13 = vmax.f32 %v93_v11, 0.0 }
  0xcd   :  { %v95_v14 = vpop.f32.mrf.mxu0 }
  0xce   :  { %v99_v15 = vpack.c.bf16 %v98_v13, %v98_v13 }
  0xcf   :  { %v277_v16 = vpop.f32.mrf.mxu0 }
  0xd0   :  { %287 = vmatmul.mubr.msk.bf16.vlgmr.msra.gmra.mxu1 %vm139_vm2, %v99_v15 }
 0x190   :  { %v177_v18 = vpop.f32.mrf.mxu1 }
 0x191   :  { %v178_v19 = vadd.f32 %v255_v17, %v177_v18 }
 0x192   :  { %v288_v20 = vpop.f32.mrf.mxu1 }
 0x193   :  { %v183_v22 = vmax.f32 %v178_v19, 0.0 }
 0x194   :  { %v180_v23 = vpop.f32.mrf.mxu1 }
 0x195   :  { %v191_v24 = vmul.f32 %v261_v21, %v183_v22 }
 0x196   :  { %v289_v25 = vpop.f32.mrf.mxu1 }
 0x197   :  { %v192_v26 = vsel %vm54_vm1, %v191_v24, 0.0 }
 0x198   :  { %193 = vadd.xlane.f32.xlu0 %v192_v26 }
 0x221   :  { %v194_v28 = vpop.xlane.xlu0 %193 }
 0x222   :  { %v197_v29 = vadd.f32 %v196_v27, %v194_v28 }
 0x224   :  { %v198_v30 = vsub.f32 0.0, %v197_v29 }
 0x226   :  { %v199_v31 = vmul.f32 1.442695, %v198_v30 }
 0x228   :  { %299 = vpow2.f32 %v199_v31 }
 0x235   :  { %v300_v32 = vpop.eup %299 }
 0x236   :  { %v201_v33 = vadd.f32 1.0, %v300_v32 }
 0x238   :  { %301 = vrcp.f32 %v201_v33 }
 0x245   :  { %v302_v34 = vpop.eup %301 }
 0x246   :  { %203 = vxpose.xlu0.b32.start.end [1/1] (short) (narrow) %v302_v34, 8 }
 0x2c2   :  { %v219_v35 = vpop.trf.xlu0 }
 0x2c3   :  { %236 = vst.msk [vmem:[#allocation3] sm:$0x1] %vm235_vm3, %v219_v35 }
 0x2c4   :  { %314 = shalt.err (!%p311_p4)
}
 0x2c5   :  { %246 = dma.vmem_to_hbm [thread:$0]  %s244_s5, 16, %s413_s7, [#allocation4]  }
 0x2c6   :  { %323 = dma.done.wait [#allocation4], 16  }
 0x2c7   :  { %324 = vsyncadd [#allocation4], 4294967280 }
 0x2c8   :  { %250 = vsyncpa [#allocation4], 1 }

</bundles_post_ra>
